<compile_context>
chip_gen: v7x
topology: tpu7x:2x2x1
jax: 0.10.0
libtpu: 0.0.40
codegen_flags: <defaults>
</compile_context>

<pallas_src>
import functools

import jax
import jax.numpy as jnp
from jax.experimental import pallas as pl
from jax.experimental.pallas import tpu as pltpu

LN_EPS = 1e-5  # torch.nn.LayerNorm default


def _round_up(a, b):
    return (a + b - 1) // b * b


def _pad_dim(d):
    """Lane-align a channel dim: multiple of 128 always; bump to a multiple of
    256 when nearly free (<=12.5% extra) to keep the v6e/v7x 2x256^2 MXUs fed."""
    p128 = _round_up(d, 128)
    p256 = _round_up(d, 256)
    return p256 if (p256 - d) * 8 <= d else p128


def _vmem_footprint(tm, tf, d_pad, x_bytes, o_bytes):
    """Approximate VMEM bytes for one grid step (double-buffered streams)."""
    return (2 * tm * d_pad * x_bytes          # x row tile, double-buffered
            + 2 * tm * d_pad * o_bytes        # out row tile, double-buffered
            + 2 * 2 * d_pad * tf * 2          # W1/W2 bf16 chunks, double-buffered
            + 2 * (tf + 3 * d_pad) * 4        # b1 chunk, b2, gamma, beta
            + tm * d_pad * 4                  # f32 accumulator scratch
            + tm * tf * 4                     # live (tm, tf) hidden intermediate
            + tm * d_pad * 4)                 # bf16-cast copies / slack


def _ffn_kernel(x_ref, w1_ref, b1_ref, w2_ref, b2_ref, gamma_ref, beta_ref,
                o_ref, acc_ref, *, model_dim):
    """One (row-tile, F-chunk) grid step of the fused FFN+residual+LayerNorm.

    Grid = (row tiles, F chunks); the F axis is the reduction axis (innermost,
    "arbitrary").  acc accumulates sum_f relu(x @ W1[:, f] + b1[f]) @ W2[f, :],
    which is exact because the first matmul contracts the full D and ReLU acts
    per hidden channel.

    x_ref:      (tm, Dp)  input rows (resident across the F axis)
    w1_ref:     (Dp, tf)  bf16 chunk of W1^T  (1x1 conv == per-position linear)
    b1_ref:     (1, tf)   f32 chunk of b1
    w2_ref:     (tf, Dp)  bf16 chunk of W2^T
    b2_ref:     (1, Dp)   f32
    gamma/beta: (1, Dp)   LayerNorm affine params, f32
    o_ref:      (tm, Dp)
    acc_ref:    (tm, Dp)  f32 scratch accumulator
    """
    f = pl.program_id(1)

    @pl.when(f == 0)
    def _init():
        acc_ref[...] = jnp.zeros_like(acc_ref)

    # MXU hot path: bf16 operands, f32 accumulation.  Skip the f32 round trip
    # when the input is already bf16 (saves a (tm, Dp) VPU cast + live copy).
    x_in = x_ref[...]
    xb = x_in if x_in.dtype == jnp.bfloat16 else x_in.astype(jnp.bfloat16)

    h = jnp.dot(xb, w1_ref[...], preferred_element_type=jnp.float32)
    h = jnp.maximum(h + b1_ref[...], 0.0)
    acc_ref[...] += jnp.dot(h.astype(jnp.bfloat16), w2_ref[...],
                            preferred_element_type=jnp.float32)

    @pl.when(f == pl.num_programs(1) - 1)
    def _finalize():
        # dropout(p=0.0) is the identity; residual + LayerNorm in f32.
        r = x_ref[...].astype(jnp.float32) + acc_ref[...] + b2_ref[...]
        # Single-pass LN statistics.  Padded channels of r are exactly zero,
        # so summing over Dp and dividing by the true model_dim is exact.
        inv_d = jnp.float32(1.0 / model_dim)
        s1 = jnp.sum(r, axis=-1, keepdims=True)
        s2 = jnp.sum(r * r, axis=-1, keepdims=True)
        mean = s1 * inv_d
        var = s2 * inv_d - mean * mean
        normed = (r - mean) * jax.lax.rsqrt(var + LN_EPS)
        o_ref[...] = (normed * gamma_ref[...] + beta_ref[...]).astype(o_ref.dtype)


@functools.partial(jax.jit, static_argnames=("tm", "tf"))
def positional_wise_feed_forward(x, w1, b1, w2, b2, gamma, beta, *,
                                 tm=None, tf=None):
    """x: (B, L, D).  w1: (D, F), b1: (F,), w2: (F, D), b2/gamma/beta: (D,).

    w1/w2 are the transposed (in, out) 2-D matrices of the PyTorch Conv1d
    weights (Conv1d(in, out, 1).weight has shape (out, in, 1)).  Residual
    requires ffn_dim == model_dim, exactly like the PyTorch forward().
    """
    B, L, D = x.shape
    F = w1.shape[1]
    n = B * L

    d_pad = _pad_dim(D)
    f_pad0 = _pad_dim(F)
    x_bytes = jnp.dtype(x.dtype).itemsize

    # ---- Row tile: per-generation default, balanced so the padded tail is small.
    if tm is None:
        # Small D/F -> HBM-bound: bigger row tile amortizes ~0.35us/step overhead.
        tm_base = 512 if d_pad * f_pad0 <= 512 * 512 else 256
        try:
            kind = jax.devices()[0].device_kind.lower()
            if ("v5 lite" in kind) or ("v5e" in kind) or ("v5lite" in kind):
                tm_base = min(tm_base, 128)  # 4x128^2 MXU, smaller live set
        except Exception:
            pass
    else:
        tm_base = tm
    g_rows = -(-n // tm_base)
    tm_eff = _round_up(-(-n // g_rows), 8)   # balance tiles -> minimal zero tail
    n_pad = g_rows * tm_eff

    # ---- F (hidden) tile: bounds weight VMEM so transformer-size FFNs fit.
    # (v7x has only 64 MiB VMEM *per TensorCore*, and each TC holds its own
    #  copy of the streamed weight chunks when the row axis is core-parallel.)
    if tf is None:
        tf_eff = min(f_pad0, 1024)
    else:
        tf_eff = min(_round_up(tf, 128), f_pad0)
    vmem_budget = 40 * 1024 * 1024
    while (_vmem_footprint(tm_eff, tf_eff, d_pad, x_bytes, x_bytes) > vmem_budget
           and tf_eff > 256):
        tf_eff = max(256, _round_up(tf_eff // 2, 128))
    f_pad = _round_up(f_pad0, tf_eff)
    g_f = f_pad // tf_eff

    # ---- Zero-pad operands (numerically exact: padded channels contribute 0).
    x2 = x.reshape(n, D)
    if n_pad != n or d_pad != D:
        x2 = jnp.pad(x2, ((0, n_pad - n), (0, d_pad - D)))
    w1p = jnp.pad(w1, ((0, d_pad - D), (0, f_pad - F))).astype(jnp.bfloat16)
    w2p = jnp.pad(w2, ((0, f_pad - F), (0, d_pad - D))).astype(jnp.bfloat16)
    b1p = jnp.pad(b1.astype(jnp.float32), (0, f_pad - F)).reshape(1, f_pad)
    b2p = jnp.pad(b2.astype(jnp.float32), (0, d_pad - D)).reshape(1, d_pad)
    gp = jnp.pad(gamma.astype(jnp.float32), (0, d_pad - D)).reshape(1, d_pad)
    bp = jnp.pad(beta.astype(jnp.float32), (0, d_pad - D)).reshape(1, d_pad)

    # Constant-index operands: single-buffered (never re-DMA'd).
    def _const(shape):
        return pl.BlockSpec(shape, lambda i, f: (0, 0),
                            pipeline_mode=pl.Buffered(1))

    # Scheduler hints: weights are re-streamed once per row tile (F-tiled).
    flops = 4 * n_pad * d_pad * f_pad + 10 * n_pad * d_pad
    bytes_accessed = (2 * n_pad * d_pad * x_bytes            # x in + out
                      + g_rows * 2 * d_pad * f_pad * 2       # bf16 weight chunks
                      + (f_pad + 3 * d_pad) * 4)             # biases, gamma, beta
    vmem_limit = int(min(
        _vmem_footprint(tm_eff, tf_eff, d_pad, x_bytes, x_bytes)
        + 16 * 1024 * 1024,                                   # compiler scratch slack
        64 * 1024 * 1024))                                    # v7x-safe cap

    out = pl.pallas_call(
        functools.partial(_ffn_kernel, model_dim=D),
        out_shape=jax.ShapeDtypeStruct((n_pad, d_pad), x.dtype),
        grid_spec=pltpu.PrefetchScalarGridSpec(
            num_scalar_prefetch=0,
            grid=(g_rows, g_f),                                  # reduction (F) axis last
            in_specs=[
                pl.BlockSpec((tm_eff, d_pad), lambda i, f: (i, 0)),   # x row tile
                pl.BlockSpec((d_pad, tf_eff), lambda i, f: (0, f)),   # W1^T chunk (bf16)
                pl.BlockSpec((1, tf_eff), lambda i, f: (0, f)),       # b1 chunk
                pl.BlockSpec((tf_eff, d_pad), lambda i, f: (f, 0)),   # W2^T chunk (bf16)
                _const((1, d_pad)),                                   # b2
                _const((1, d_pad)),                                   # gamma
                _const((1, d_pad)),                                   # beta
            ],
            out_specs=pl.BlockSpec((tm_eff, d_pad), lambda i, f: (i, 0)),
            scratch_shapes=[pltpu.VMEM((tm_eff, d_pad), jnp.float32)],
        ),
        compiler_params=pltpu.CompilerParams(
            dimension_semantics=("parallel", "arbitrary"),
            vmem_limit_bytes=vmem_limit),
        cost_estimate=pl.CostEstimate(
            flops=int(flops), transcendentals=int(n_pad),
            bytes_accessed=int(bytes_accessed)),
    )(x2, w1p, b1p, w2p, b2p, gp, bp)

    return out[:n, :D].reshape(B, L, D)


def _reference(x, w1, b1, w2, b2, gamma, beta):
    """Pure-JAX f32 reference mirroring the PyTorch forward."""
    h = jnp.maximum(jnp.einsum("bld,df->blf", x, w1) + b1, 0.0)
    y = jnp.einsum("blf,fd->bld", h, w2) + b2
    r = x + y
    mean = jnp.mean(r, axis=-1, keepdims=True)
    var = jnp.mean((r - mean) ** 2, axis=-1, keepdims=True)
    return (r - mean) / jnp.sqrt(var + LN_EPS) * gamma + beta


if __name__ == "__main__":
    # Small shapes consistent with the module (ffn_dim must equal model_dim for
    # this forward() to be well-defined).
    batch, seq, model_dim, ffn_dim = 2, 8, 128, 128

    key = jax.random.PRNGKey(0)
    kx, k1, kb1, k2, kb2 = jax.random.split(key, 5)

    x = jax.random.normal(kx, (batch, seq, model_dim), dtype=jnp.float32)

    # Conv1d(in, out, 1) weights are (out, in, 1); store the transposed 2-D
    # matrices (in, out) the kernel multiplies with.
    w1 = jax.random.normal(k1, (model_dim, ffn_dim), jnp.float32) * 0.05
    b1 = jax.random.normal(kb1, (ffn_dim,), jnp.float32) * 0.05
    w2 = jax.random.normal(k2, (ffn_dim, model_dim), jnp.float32) * 0.05
    b2 = jax.random.normal(kb2, (model_dim,), jnp.float32) * 0.05
    gamma = jnp.ones((model_dim,), jnp.float32)   # LayerNorm weight init
    beta = jnp.zeros((model_dim,), jnp.float32)   # LayerNorm bias init

    out = positional_wise_feed_forward(x, w1, b1, w2, b2, gamma, beta)
    out = jax.block_until_ready(out)

    ref = _reference(x, w1, b1, w2, b2, gamma, beta)
    assert out.shape == (batch, seq, model_dim)
    # bf16 MXU operands (f32 accumulation) vs. a pure-f32 reference: ~1e-3
    # absolute error expected on the LN-normalized output; 2e-2 gives margin.
    assert jnp.allclose(out, ref, atol=2e-2, rtol=2e-2), "mismatch vs reference"

    print("KERNEL_OK")
</pallas_src>

<mosaic_0001>
module attributes {stable_mosaic.version = 11 : i64} {
  func.func @_ffn_kernel(%arg0: i32, %arg1: i32, %arg2: memref<16x128xf32, #tpu.memory_space<vmem>>, %arg3: memref<128x128xbf16, #tpu.memory_space<vmem>>, %arg4: memref<1x128xf32, #tpu.memory_space<vmem>>, %arg5: memref<128x128xbf16, #tpu.memory_space<vmem>>, %arg6: memref<1x128xf32, #tpu.memory_space<vmem>>, %arg7: memref<1x128xf32, #tpu.memory_space<vmem>>, %arg8: memref<1x128xf32, #tpu.memory_space<vmem>>, %arg9: memref<16x128xf32, #tpu.memory_space<vmem>>, %arg10: memref<16x128xf32, #tpu.memory_space<vmem>>) attributes {dimension_semantics = [#tpu.dimension_semantics<parallel>, #tpu.dimension_semantics<arbitrary>], iteration_bounds = array<i64: 1, 1>, scalar_prefetch = 0 : i64, scratch_operands = 1 : i64, tpu.core_type = #tpu.core_type<tc>, window_params = [{transform_indices = @transform_0, window_bounds = array<i64: 16, 128>}, {transform_indices = @transform_1, window_bounds = array<i64: 128, 128>}, {transform_indices = @transform_2, window_bounds = array<i64: 1, 128>}, {transform_indices = @transform_3, window_bounds = array<i64: 128, 128>}, {pipeline_mode = #tpu.pipeline_mode<synchronous>, transform_indices = @transform_4, window_bounds = array<i64: 1, 128>}, {pipeline_mode = #tpu.pipeline_mode<synchronous>, transform_indices = @transform_5, window_bounds = array<i64: 1, 128>}, {pipeline_mode = #tpu.pipeline_mode<synchronous>, transform_indices = @transform_6, window_bounds = array<i64: 1, 128>}, {transform_indices = @transform_7, window_bounds = array<i64: 16, 128>}]} {
    %c0_i32 = arith.constant 0 : i32
    %0 = arith.cmpi eq, %arg1, %c0_i32 : i32
    %1 = arith.extui %0 : i1 to i32
    %c0_i32_0 = arith.constant 0 : i32
    %2 = arith.cmpi ne, %1, %c0_i32_0 : i32
    scf.if %2 {
      %cst_16 = arith.constant 0.000000e+00 : f32
      %21 = vector.broadcast %cst_16 : f32 to vector<16x128xf32>
      %c0_17 = arith.constant 0 : index
      %c0_18 = arith.constant 0 : index
      %22 = vector.load %arg10[%c0_17, %c0_18] : memref<16x128xf32, #tpu.memory_space<vmem>>, vector<16x128xf32>
      tpu.vector_store %arg10[%c0_17, %c0_18], %21 {strides = array<i32>} : memref<16x128xf32, #tpu.memory_space<vmem>>, vector<16x128xf32>,
    } else {
    }
    %c0 = arith.constant 0 : index
    %c0_1 = arith.constant 0 : index
    %3 = vector.load %arg2[%c0, %c0_1] : memref<16x128xf32, #tpu.memory_space<vmem>>, vector<16x128xf32>
    %4 = arith.truncf %3 : vector<16x128xf32> to vector<16x128xbf16>
    %c0_2 = arith.constant 0 : index
    %c0_3 = arith.constant 0 : index
    %5 = vector.load %arg3[%c0_2, %c0_3] : memref<128x128xbf16, #tpu.memory_space<vmem>>, vector<128x128xbf16>
    %cst = arith.constant dense<0.000000e+00> : vector<16x128xf32>
    %6 = tpu.matmul %4, %5, %cst {dimension_numbers = #tpu.dot_dimension_numbers<[1], [0], [0], [1], [0, 0, 1, 1], [], []>} : vector<16x128xbf16>, vector<128x128xbf16>, vector<16x128xf32> -> vector<16x128xf32>
    %c0_4 = arith.constant 0 : index
    %c0_5 = arith.constant 0 : index
    %7 = vector.load %arg4[%c0_4, %c0_5] : memref<1x128xf32, #tpu.memory_space<vmem>>, vector<1x128xf32>
    %8 = vector.broadcast %7 : vector<1x128xf32> to vector<16x128xf32>
    %9 = arith.addf %6, %8 : vector<16x128xf32>
    %cst_6 = arith.constant 0.000000e+00 : f32
    %10 = vector.broadcast %cst_6 : f32 to vector<16x128xf32>
    %11 = arith.maximumf %9, %10 : vector<16x128xf32>
    %c0_7 = arith.constant 0 : index
    %c0_8 = arith.constant 0 : index
    %12 = vector.load %arg10[%c0_7, %c0_8] : memref<16x128xf32, #tpu.memory_space<vmem>>, vector<16x128xf32>
    %13 = arith.truncf %11 : vector<16x128xf32> to vector<16x128xbf16>
    %c0_9 = arith.constant 0 : index
    %c0_10 = arith.constant 0 : index
    %14 = vector.load %arg5[%c0_9, %c0_10] : memref<128x128xbf16, #tpu.memory_space<vmem>>, vector<128x128xbf16>
    %cst_11 = arith.constant dense<0.000000e+00> : vector<16x128xf32>
    %15 = tpu.matmul %13, %14, %cst_11 {dimension_numbers = #tpu.dot_dimension_numbers<[1], [0], [0], [1], [0, 0, 1, 1], [], []>} : vector<16x128xbf16>, vector<128x128xbf16>, vector<16x128xf32> -> vector<16x128xf32>
    %16 = arith.addf %12, %15 : vector<16x128xf32>
    %c0_12 = arith.constant 0 : index
    %c0_13 = arith.constant 0 : index
    %17 = vector.load %arg10[%c0_12, %c0_13] : memref<16x128xf32, #tpu.memory_space<vmem>>, vector<16x128xf32>
    tpu.vector_store %arg10[%c0_12, %c0_13], %16 {strides = array<i32>} : memref<16x128xf32, #tpu.memory_space<vmem>>, vector<16x128xf32>,
    %c0_i32_14 = arith.constant 0 : i32
    %18 = arith.cmpi eq, %arg1, %c0_i32_14 : i32
    %19 = arith.extui %18 : i1 to i32
    %c0_i32_15 = arith.constant 0 : i32
    %20 = arith.cmpi ne, %19, %c0_i32_15 : i32
    scf.if %20 {
      %c0_16 = arith.constant 0 : index
      %c0_17 = arith.constant 0 : index
      %21 = vector.load %arg2[%c0_16, %c0_17] : memref<16x128xf32, #tpu.memory_space<vmem>>, vector<16x128xf32>
      %c0_18 = arith.constant 0 : index
      %c0_19 = arith.constant 0 : index
      %22 = vector.load %arg10[%c0_18, %c0_19] : memref<16x128xf32, #tpu.memory_space<vmem>>, vector<16x128xf32>
      %23 = arith.addf %21, %22 : vector<16x128xf32>
      %c0_20 = arith.constant 0 : index
      %c0_21 = arith.constant 0 : index
      %24 = vector.load %arg6[%c0_20, %c0_21] : memref<1x128xf32, #tpu.memory_space<vmem>>, vector<1x128xf32>
      %25 = vector.broadcast %24 : vector<1x128xf32> to vector<16x128xf32>
      %26 = arith.addf %23, %25 : vector<16x128xf32>
      %cst_22 = arith.constant dense<0.000000e+00> : vector<16xf32>
      %27 = vector.multi_reduction <add>, %26, %cst_22 [1] : vector<16x128xf32> to vector<16xf32>
      %28 = vector.shape_cast %27 : vector<16xf32> to vector<16x1xf32>
      %29 = arith.mulf %26, %26 : vector<16x128xf32>
      %cst_23 = arith.constant dense<0.000000e+00> : vector<16xf32>
      %30 = vector.multi_reduction <add>, %29, %cst_23 [1] : vector<16x128xf32> to vector<16xf32>
      %31 = vector.shape_cast %30 : vector<16xf32> to vector<16x1xf32>
      %cst_24 = arith.constant 7.812500e-03 : f32
      %32 = vector.broadcast %cst_24 : f32 to vector<16x1xf32>
      %33 = arith.mulf %28, %32 : vector<16x1xf32>
      %cst_25 = arith.constant 7.812500e-03 : f32
      %34 = vector.broadcast %cst_25 : f32 to vector<16x1xf32>
      %35 = arith.mulf %31, %34 : vector<16x1xf32>
      %36 = arith.mulf %33, %33 : vector<16x1xf32>
      %37 = arith.subf %35, %36 : vector<16x1xf32>
      %38 = vector.broadcast %33 : vector<16x1xf32> to vector<16x128xf32>
      %39 = arith.subf %26, %38 : vector<16x128xf32>
      %cst_26 = arith.constant 9.99999974E-6 : f32
      %40 = vector.broadcast %cst_26 : f32 to vector<16x1xf32>
      %41 = arith.addf %37, %40 : vector<16x1xf32>
      %42 = math.rsqrt %41 : vector<16x1xf32>
      %43 = vector.broadcast %42 : vector<16x1xf32> to vector<16x128xf32>
      %44 = arith.mulf %39, %43 : vector<16x128xf32>
      %c0_27 = arith.constant 0 : index
      %c0_28 = arith.constant 0 : index
      %45 = vector.load %arg7[%c0_27, %c0_28] : memref<1x128xf32, #tpu.memory_space<vmem>>, vector<1x128xf32>
      %46 = vector.broadcast %45 : vector<1x128xf32> to vector<16x128xf32>
      %47 = arith.mulf %44, %46 : vector<16x128xf32>
      %c0_29 = arith.constant 0 : index
      %c0_30 = arith.constant 0 : index
      %48 = vector.load %arg8[%c0_29, %c0_30] : memref<1x128xf32, #tpu.memory_space<vmem>>, vector<1x128xf32>
      %49 = vector.broadcast %48 : vector<1x128xf32> to vector<16x128xf32>
      %50 = arith.addf %47, %49 : vector<16x128xf32>
      %c0_31 = arith.constant 0 : index
      %c0_32 = arith.constant 0 : index
      %51 = vector.load %arg9[%c0_31, %c0_32] : memref<16x128xf32, #tpu.memory_space<vmem>>, vector<16x128xf32>
      tpu.vector_store %arg9[%c0_31, %c0_32], %50 {strides = array<i32>} : memref<16x128xf32, #tpu.memory_space<vmem>>, vector<16x128xf32>,
    } else {
    }
    return
  }
  func.func @transform_0(%arg0: i32, %arg1: i32) -> (i32, i32) {
    %c0_i32 = arith.constant 0 : i32
    %c0_i32_0 = arith.constant 0 : i32
    return %arg0, %c0_i32 : i32, i32
  }
  func.func @transform_1(%arg0: i32, %arg1: i32) -> (i32, i32) {
    %c0_i32 = arith.constant 0 : i32
    %c0_i32_0 = arith.constant 0 : i32
    return %c0_i32, %arg1 : i32, i32
  }
  func.func @transform_2(%arg0: i32, %arg1: i32) -> (i32, i32) {
    %c0_i32 = arith.constant 0 : i32
    %c0_i32_0 = arith.constant 0 : i32
    return %c0_i32, %arg1 : i32, i32
  }
  func.func @transform_3(%arg0: i32, %arg1: i32) -> (i32, i32) {
    %c0_i32 = arith.constant 0 : i32
    %c0_i32_0 = arith.constant 0 : i32
    return %arg1, %c0_i32 : i32, i32
  }
  func.func @transform_4(%arg0: i32, %arg1: i32) -> (i32, i32) {
    %c0_i32 = arith.constant 0 : i32
    %c0_i32_0 = arith.constant 0 : i32
    %c0_i32_1 = arith.constant 0 : i32
    return %c0_i32, %c0_i32_0 : i32, i32
  }
  func.func @transform_5(%arg0: i32, %arg1: i32) -> (i32, i32) {
    %c0_i32 = arith.constant 0 : i32
    %c0_i32_0 = arith.constant 0 : i32
    %c0_i32_1 = arith.constant 0 : i32
    return %c0_i32, %c0_i32_0 : i32, i32
  }
  func.func @transform_6(%arg0: i32, %arg1: i32) -> (i32, i32) {
    %c0_i32 = arith.constant 0 : i32
    %c0_i32_0 = arith.constant 0 : i32
    %c0_i32_1 = arith.constant 0 : i32
    return %c0_i32, %c0_i32_0 : i32, i32
  }
  func.func @transform_7(%arg0: i32, %arg1: i32) -> (i32, i32) {
    %c0_i32 = arith.constant 0 : i32
    %c0_i32_0 = arith.constant 0 : i32
    return %arg0, %c0_i32 : i32, i32
  }
}

</mosaic_0001>

<bundles_post_ra>
// kernel: positional_wise_feed_forward.1
= control target key start
LH: loop header
LB: loop body
LE: loop exit
PB: predicated region body
PF: predicated region fallthrough
CT: control target
= control target key end

     0   :  { %v470_v1 = vmov 0.0   ;;  %vm471_vm0 = vmmov 0   ;;  %s593_s0 = inlined_call_operand.vmem [shape: f32[16,128], index: 0, kind: input, shape index: {}]   ;;  %s594_s1 = inlined_call_operand.vmem [shape: bf16[128,128], index: 1, kind: input, shape index: {}]   ;;  %s595_s2 = inlined_call_operand.vmem [shape: f32[1,128], index: 2, kind: input, shape index: {}]   ;;  %s596_s3 = inlined_call_operand.vmem [shape: bf16[128,128], index: 3, kind: input, shape index: {}]   ;;  %s597_s4 = inlined_call_operand.vmem [shape: f32[1,128], index: 4, kind: input, shape index: {}]   ;;  %s598_s5 = inlined_call_operand.vmem [shape: f32[1,128], index: 5, kind: input, shape index: {}]   ;;  %s599_s6 = inlined_call_operand.vmem [shape: f32[1,128], index: 6, kind: input, shape index: {}]   ;;  %s600_s7 = inlined_call_operand.hbm [shape: f32[16,128], index: 7, kind: output, shape index: {}]  }
   0x1   :  { %v426_v0 = vld [vmem:[%s594_s1] sm:$0xff]   ;;  %381 = vmatprep.subr.bf16.mxu0 %v470_v1  ;;  %401 = vmatprep.subr.bf16.mxu1 %v470_v1  ;;  %v427_v2 = vld [vmem:[%s594_s1 + $0x8] sm:$0xff]   ;;  %v428_v3 = vld [vmem:[%s594_s1 + $0x10] sm:$0xff]  }
   0x2   :  { %382 = vmatpush3.bf16.msra.mxu0 %v426_v0  ;;  %397 = vmatprep.mubr.msk.bf16.mxu0 %vm471_vm0, %v470_v1  ;;  %v434_v4 = vld [vmem:[%s596_s3] sm:$0xff]   ;;  %v429_v5 = vld [vmem:[%s594_s1 + $0x18] sm:$0xff]   ;;  %v435_v6 = vld [vmem:[%s596_s3 + $0x8] sm:$0xff]  }
   0x3   :  { %383 = vmatprep.subr.bf16.mxu0 %v470_v1  ;;  %417 = vmatprep.mubr.msk.bf16.mxu1 %vm471_vm0, %v470_v1  ;;  %v430_v7 = vld [vmem:[%s594_s1 + $0x20] sm:$0xff]   ;;  %v436_v8 = vld [vmem:[%s596_s3 + $0x10] sm:$0xff]  }
   0x4   :  { %402 = vmatpush3.bf16.msra.mxu1 %v434_v4 }
   0x5   :  { %403 = vmatprep.subr.bf16.mxu1 %v470_v1 }
   0x6   :  { %384 = vmatpush3.bf16.msra.mxu0 %v427_v2 }
   0x7   :  { %385 = vmatprep.subr.bf16.mxu0 %v470_v1 }
   0x8   :  { %404 = vmatpush3.bf16.msra.mxu1 %v435_v6 }
   0x9   :  { %405 = vmatprep.subr.bf16.mxu1 %v470_v1 }
   0xa   :  { %386 = vmatpush3.bf16.msra.mxu0 %v428_v3 }
   0xb   :  { %387 = vmatprep.subr.bf16.mxu0 %v470_v1 }
   0xe   :  { %388 = vmatpush3.bf16.msra.mxu0 %v429_v5 }
   0xf   :  { %389 = vmatprep.subr.bf16.mxu0 %v470_v1 }
  0x10   :  { %12 = vsyncpa [#allocation4], 0  ;;  %v431_v9 = vld [vmem:[%s594_s1 + $0x28] sm:$0xff]   ;;  %406 = vmatpush3.bf16.msra.mxu1 %v436_v8  ;;  %v437_v10 = vld [vmem:[%s596_s3 + $0x18] sm:$0xff]   ;;  %s472_s17 = smov [#allocation3]  }
  0x11   :  { %407 = vmatprep.subr.bf16.mxu1 %v470_v1  ;;  %v432_v11 = vld [vmem:[%s594_s1 + $0x30] sm:$0xff]   ;;  %v438_v12 = vld [vmem:[%s596_s3 + $0x20] sm:$0xff]   ;;  %v433_v13 = vld [vmem:[%s594_s1 + $0x38] sm:$0xff]   ;;  %s332_s18 = sshll.u32 %s472_s17, 4  ;;  %s333_s18 = int_to_ptr.vmem [resolvable:$true] %s332_s18 }
  0x12   :  { %390 = vmatpush3.bf16.msra.mxu0 %v430_v7  ;;  %v34_v14 = vld [vmem:[%s593_s0] sm:$0xff]  ;;  %v35_v15 = vld [vmem:[%s593_s0 + $0x8] sm:$0xff]  ;;  %v440_v18 = vld [vmem:[%s596_s3 + $0x30] sm:$0xff]   ;;  %s446_s19 = scalar_lea.vmem %s333_s18, 256  ;;  %p451_p1 = scmp.lt.s32.totalorder %s333_s18, %s333_s18 }
  0x13   :  { %391 = vmatprep.subr.bf16.mxu0 %v470_v1  ;;  %v439_v16 = vld [vmem:[%s596_s3 + $0x28] sm:$0xff]   ;;  %v36_v17 = vpack.c.bf16 %v35_v15, %v34_v14  ;;  %v441_v19 = vld [vmem:[%s596_s3 + $0x38] sm:$0xff]   ;;  %v343_v20 = vld [vmem:[%s595_s2] ss:$0 sm:$0xff]  ;;  %p447_p0 = scmp.ne.s32.totalorder %s333_s18, %s446_s19  ;;  %p452_p2 = scmp.lt.s32.totalorder %s446_s19, %s446_s19 }
  0x14   :  { %408 = vmatpush3.bf16.msra.mxu1 %v437_v10  ;;  %v360_v31 = vld [vmem:[%s597_s4] ss:$0 sm:$0xff] }
  0x15   :  { %409 = vmatprep.subr.bf16.mxu1 %v470_v1  ;;  %v361_v57 = vld [vmem:[%s598_s5] ss:$0 sm:$0xff]  ;;  %p453_p3 = por %p452_p2, %p451_p1 }
  0x16   :  { %392 = vmatpush3.bf16.msra.mxu0 %v431_v9  ;;  %v362_v59 = vld [vmem:[%s599_s6] ss:$0 sm:$0xff] }
  0x17   :  { %393 = vmatprep.subr.bf16.mxu0 %v470_v1  ;;  %p454_p4 = pnand %p453_p3, %p447_p0 }
  0x18   :  { %410 = vmatpush3.bf16.msra.mxu1 %v438_v12 }
  0x19   :  { %411 = vmatprep.subr.bf16.mxu1 %v470_v1 }
  0x1a   :  { %394 = vmatpush3.bf16.msra.mxu0 %v432_v11 }
  0x1b   :  { %395 = vmatprep.subr.bf16.mxu0 %v470_v1 }
  0x1c   :  { %412 = vmatpush3.bf16.msra.mxu1 %v439_v16 }
  0x1d   :  { %413 = vmatprep.subr.bf16.mxu1 %v470_v1 }
  0x1e   :  { %396 = vmatpush3.bf16.msra.mxu0 %v433_v13 }
  0x20   :  { %414 = vmatpush3.bf16.msra.mxu1 %v440_v18 }
  0x21   :  { %398 = vmatmul.mubr.bf16.vlgmr.msra.gmra.mrb[0].mxu0 %v36_v17  ;;  %415 = vmatprep.subr.bf16.mxu1 %v470_v1 }
  0x24   :  { %416 = vmatpush3.bf16.msra.mxu1 %v441_v19 }
  0xf4   :  { %v142_v21 = vpop.f32.mrb[0].mxu0 }
  0xf5   :  { %v143_v22 = vadd.f32 %v343_v20, %v142_v21  ;;  %v399_v23 = vpop.f32.mrb[1].mxu0 }
  0xf6   :  { %v145_v24 = vpop.f32.mrb[2].mxu0 }
  0xf7   :  { %v146_v25 = vadd.f32 %v343_v20, %v145_v24  ;;  %v400_v26 = vpop.f32.mrb[3].mxu0  ;;  %v149_v27 = vmax.f32 %v143_v22, 0.0 }
  0xf9   :  { %v150_v28 = vmax.f32 %v146_v25, 0.0 }
  0xfb   :  { %v153_v29 = vpack.c.bf16 %v150_v28, %v149_v27 }
  0xfd   :  { %418 = vmatmul.mubr.bf16.vlgmr.msra.gmra.mrb[0].mxu1 %v153_v29 }
 0x1d0   :  { %v252_v30 = vpop.f32.mrb[0].mxu1 }
 0x1d1   :  { %v270_v32 = vadd.f32 %v252_v30, %v34_v14  ;;  %v419_v33 = vpop.f32.mrb[1].mxu1 }
 0x1d2   :  { %v255_v34 = vpop.f32.mrb[2].mxu1 }
 0x1d3   :  { %v279_v35 = vadd.f32 %v360_v31, %v270_v32  ;;  %v271_v36 = vadd.f32 %v255_v34, %v35_v15  ;;  %v420_v37 = vpop.f32.mrb[3].mxu1 }
 0x1d5   :  { %v280_v38 = vadd.f32 %v360_v31, %v271_v36  ;;  %281 = vadd.xlane.f32.xlu0 %v279_v35  ;;  %v285_v39 = vmul.f32 %v279_v35, %v279_v35 }
 0x1d7   :  { %287 = vadd.xlane.f32.xlu1 %v285_v39  ;;  %v286_v40 = vmul.f32 %v280_v38, %v280_v38 }
 0x1d9   :  { %283 = vadd.xlane.f32.xlu0 %v280_v38 }
 0x1db   :  { %289 = vadd.xlane.f32.xlu1 %v286_v40 }
 0x262   :  { %v282_v41 = vpop.xlane.xlu0 %281 }
 0x263   :  { %v291_v42 = vmul.f32 0.0078125, %v282_v41 }
 0x264   :  { %v288_v43 = vpop.xlane.xlu1 %287 }
 0x265   :  { %v295_v44 = vmul.f32 %v291_v42, %v291_v42  ;;  %v293_v45 = vmul.f32 0.0078125, %v288_v43  ;;  %v299_v55 = vsub.f32 %v279_v35, %v291_v42 }
 0x266   :  { %v284_v46 = vpop.xlane.xlu0 %283 }
 0x267   :  { %v297_v47 = vsub.f32 %v293_v45, %v295_v44  ;;  %v292_v48 = vmul.f32 0.0078125, %v284_v46 }
 0x268   :  { %v290_v49 = vpop.xlane.xlu1 %289 }
 0x269   :  { %v301_v50 = vadd.f32 1e-05, %v297_v47  ;;  %v296_v51 = vmul.f32 %v292_v48, %v292_v48  ;;  %v294_v52 = vmul.f32 0.0078125, %v290_v49  ;;  %v300_v60 = vsub.f32 %v280_v38, %v292_v48 }
 0x26b   :  { %442 = vrsqrt.f32 %v301_v50  ;;  %v298_v53 = vsub.f32 %v294_v52, %v296_v51 }
 0x26d   :  { %v302_v54 = vadd.f32 1e-05, %v298_v53 }
 0x26f   :  { %444 = vrsqrt.f32 %v302_v54 }
 0x275   :  { %v443_v56 = vpop.eup %442 }
 0x276   :  { %v305_v58 = vmul.f32 %v443_v56, %v299_v55 }
 0x278   :  { %v314_v61 = vmul.f32 %v361_v57, %v305_v58 }
 0x279   :  { %v445_v62 = vpop.eup %444 }
 0x27a   :  { %v306_v63 = vmul.f32 %v445_v62, %v300_v60  ;;  %v323_v0 = vadd.f32 %v362_v59, %v314_v61 }
 0x27c   :  { %v315_v1 = vmul.f32 %v361_v57, %v306_v63  ;;  %325 = vst [vmem:[#allocation3] sm:$0xff] %v323_v0 }
 0x27e   :  { %v324_v2 = vadd.f32 %v362_v59, %v315_v1 }
 0x280   :  { %326 = vst [vmem:[#allocation3 + $0x8] sm:$0xff] %v324_v2 }
 0x281   :  { %457 = shalt.err (!%p454_p4)
}
 0x282   :  { %s458_s20 = scalar_lea.hbm %s600_s7, 256 }
 0x283   :  { %p459_p5 = scmp.ne.s32.totalorder %s600_s7, %s458_s20  ;;  %p462_p6 = scmp.lt.u32.totalorder %s458_s20, %s600_s7 }
 0x285   :  { %p464_p7 = pnand %p462_p6, %p459_p5 }
 0x287   :  { %467 = shalt.err (!%p464_p7)
}
 0x288   :  { %s473_s25 = smov 128   ;;  %s474_s26 = smov 8  }
 0x289   :  { %338 = dma.vmem_to_hbm [thread:$0]  %s333_s18, 256, %s600_s7, [#allocation4], %s473_s25, %s473_s25, %s474_s26  }
 0x28a   :  { %468 = dma.done.wait [#allocation4], 256  }
 0x28b   :  { %469 = vsyncadd [#allocation4], 4294967040 }
 0x28c   :  { %342 = vsyncpa [#allocation4], 1 }

</bundles_post_ra>
